<compile_context>
chip_gen: v5e
topology: v5e:2x2
jax: 0.10.0
libtpu: 0.0.40
codegen_flags: <defaults>
</compile_context>

<pallas_src>
import functools
import math

import jax
import jax.numpy as jnp
import numpy as np
from jax.experimental import pallas as pl
from jax.experimental.pallas import tpu as pltpu

LRELU_SLOPE = 0.1
_PERIODS = (2, 3, 5, 7, 11)
_CHANNELS = [(1, 32), (32, 128), (128, 512), (512, 1024), (1024, 1024)]
_KSIZE = 5
_STRIDES = (3, 3, 3, 3, 1)


def get_padding(kernel_size, dilation=1):
    return int((kernel_size * dilation - dilation) / 2)


# ----------------------------------------------------------------------------
# Pallas kernel: im2col conv (+ bias, optional leaky-relu) for one row tile.
#   x_ref : (TB, Hq, stride*cin)  bf16   stride-folded, zero-padded activations
#   w_ref : (ksize*cin, TC)       bf16   weight tile (resident across row tiles)
#   b_ref : (1, TC)               f32
#   o_ref : (TB, hout, TC)        bf16
# ----------------------------------------------------------------------------
def _conv_im2col_kernel(x_ref, w_ref, b_ref, o_ref, *, ksize, stride, cin, hout, lrelu):
    w = w_ref[...]
    bias = b_ref[...]
    tb = o_ref.shape[0]
    for i in range(tb):
        taps = []
        for k in range(ksize):
            q, r = divmod(k, stride)
            # unit-stride sublane slice; lane offsets are multiples of cin
            taps.append(x_ref[i, pl.ds(q, hout), pl.ds(r * cin, cin)])
        patches = taps[0] if len(taps) == 1 else jnp.concatenate(taps, axis=-1)
        acc = jnp.dot(patches, w, preferred_element_type=jnp.float32)  # (hout, TC) f32
        acc = acc + bias
        if lrelu:
            acc = jnp.where(acc >= 0, acc, LRELU_SLOPE * acc)
        o_ref[i] = acc.astype(o_ref.dtype)


def _lane_pad(n, lanes=128):
    return ((n + lanes - 1) // lanes) * lanes


def _pick_row_tile(n_rows, hq, sc, hout, tc, kc,
                   budget_bytes=40 * 1024 * 1024, max_tb=8):
    """Largest rows-per-step tile whose double-buffered blocks fit the VMEM budget.

    Prefers a tile that exactly divides the folded batch (no padded rows)."""
    w_bytes = 2 * kc * _lane_pad(tc) * 2                       # bf16, 2 buffers
    feasible = []
    for tb in range(1, min(max_tb, n_rows) + 1):
        x_bytes = 2 * tb * hq * _lane_pad(sc) * 2
        o_bytes = 2 * tb * hout * _lane_pad(tc) * 2
        if w_bytes + x_bytes + o_bytes <= budget_bytes:
            feasible.append(tb)
    if not feasible:
        # TODO(synk): tile the H axis (with a K-1 halo) for inputs so long that
        # even a single folded-batch row overflows the VMEM budget.
        return 1
    divisors = [tb for tb in feasible if n_rows % tb == 0]
    return max(divisors) if divisors else max(feasible)


def conv_layer_pallas(x, w, b, *, ksize, stride, pad, lrelu, tile_cout=256):
    """x: (N, H, Cin) bf16, w: (K*Cin, Cout) bf16, b: (1, Cout) f32 -> (N, Hout, Cout) bf16."""
    N, H, Cin = x.shape
    KC, Cout = w.shape
    assert KC == ksize * Cin
    Hp = H + 2 * pad
    Hout = (Hp - ksize) // stride + 1

    if Cin < 128:
        # Small-channel layers: build the (Hout, K*Cin) im2col rows in plain JAX
        # (tiny tensors) so the kernel is a single lane-dense matmul and all
        # in-kernel slices stay 128-aligned on the big layers.
        xp = jnp.pad(x, ((0, 0), (pad, pad), (0, 0)))
        cols = [xp[:, k:k + (Hout - 1) * stride + 1:stride, :] for k in range(ksize)]
        xr = jnp.concatenate(cols, axis=-1)                     # (N, Hout, K*Cin)
        k_ksize, k_stride, k_cin = 1, 1, KC
        Hq, SC = Hout, KC
    else:
        # Big-channel layers: zero-pad (= Conv2d padding) and fold the conv
        # stride into the lane axis: padded element (n, i, c) lands at
        # (n, i // stride, (i % stride)*Cin + c), so tap k = stride*q + r of
        # output row h is the unit-stride slice view[h+q, r*Cin:(r+1)*Cin].
        Hp_r = ((Hp + stride - 1) // stride) * stride
        xp = jnp.pad(x, ((0, 0), (pad, pad + (Hp_r - Hp)), (0, 0)))
        Hq, SC = Hp_r // stride, stride * Cin
        xr = xp.reshape(N, Hq, SC)
        k_ksize, k_stride, k_cin = ksize, stride, Cin

    TC = Cout if Cout <= tile_cout else tile_cout
    assert Cout % TC == 0
    TB = _pick_row_tile(N, Hq, SC, Hout, TC, KC)
    Np = ((N + TB - 1) // TB) * TB
    if Np != N:
        xr = jnp.pad(xr, ((0, Np - N), (0, 0), (0, 0)))

    kern = functools.partial(_conv_im2col_kernel, ksize=k_ksize, stride=k_stride,
                             cin=k_cin, hout=Hout, lrelu=lrelu)
    out = pl.pallas_call(
        kern,
        out_shape=jax.ShapeDtypeStruct((Np, Hout, Cout), jnp.bfloat16),
        grid_spec=pltpu.PrefetchScalarGridSpec(
            num_scalar_prefetch=0,
            # rows innermost: weight/bias block index is constant along the inner
            # axis -> the weight tile is fetched once per cout tile, not per row.
            grid=(Cout // TC, Np // TB),
            in_specs=[
                pl.BlockSpec((TB, Hq, SC), lambda c, n: (n, 0, 0)),
                pl.BlockSpec((KC, TC), lambda c, n: (0, c)),
                pl.BlockSpec((1, TC), lambda c, n: (0, c)),
            ],
            out_specs=pl.BlockSpec((TB, Hout, TC), lambda c, n: (n, 0, c)),
        ),
        compiler_params=pltpu.CompilerParams(
            dimension_semantics=("parallel", "arbitrary"),
            vmem_limit_bytes=48 * 1024 * 1024,   # leaves headroom on v7x (64 MiB)
        ),
    )(xr, w, b)
    return out[:N] if Np != N else out


# ----------------------------------------------------------------------------
# Parameters (weight_norm folded into effective weights).
# ----------------------------------------------------------------------------
def init_discp_params(key):
    params = {}
    keys = jax.random.split(key, 12)
    for i, (cin, cout) in enumerate(_CHANNELS):
        std = 1.0 / math.sqrt(cin * _KSIZE)
        params[f"conv{i}"] = (
            jax.random.normal(keys[2 * i], (_KSIZE, cin, cout), jnp.float32) * std,
            jax.random.normal(keys[2 * i + 1], (cout,), jnp.float32) * 0.01,
        )
    std = 1.0 / math.sqrt(1024 * 3)
    params["conv_post"] = (
        jax.random.normal(keys[10], (3, 1024, 1), jnp.float32) * std,
        jax.random.normal(keys[11], (1,), jnp.float32) * 0.01,
    )
    return params


def prepare_discp_params(params):
    """One-time cast/reshape into the layout the Pallas kernel consumes (bf16 weights)."""
    prep = {}
    for i, (cin, cout) in enumerate(_CHANNELS):
        w, bias = params[f"conv{i}"]
        prep[f"conv{i}"] = {
            "w": w.reshape(_KSIZE * cin, cout).astype(jnp.bfloat16),
            "b": bias.reshape(1, cout).astype(jnp.float32),
            "ksize": _KSIZE, "stride": _STRIDES[i], "pad": get_padding(_KSIZE, 1),
        }
    w, bias = params["conv_post"]                    # (3, 1024, 1), (1,)
    K, cin, cout = w.shape
    cpad = 128 - cout                                # lane-dense output stores
    prep["conv_post"] = {
        "w": jnp.pad(w, ((0, 0), (0, 0), (0, cpad))).reshape(K * cin, 128).astype(jnp.bfloat16),
        "b": jnp.pad(bias, (0, cpad)).reshape(1, 128).astype(jnp.float32),
        "ksize": K, "stride": 1, "pad": get_padding(K, 1), "true_cout": cout,
    }
    return prep


# ----------------------------------------------------------------------------
# Forward passes (glue in plain JAX, conv hot path in Pallas).
# ----------------------------------------------------------------------------
def _to_nchw(xi, b, W):
    """(b*W, H, C) folded layout -> torch NCHW (b, C, H, W), f32."""
    N, Hh, C = xi.shape
    return jnp.transpose(xi.reshape(b, W, Hh, C), (0, 3, 2, 1)).astype(jnp.float32)


def discriminator_p_forward(x, prep, period):
    """x: (b, 1, t) f32 -> (flattened logits (b, H'*W), fmap list in NCHW f32)."""
    b, c, t = x.shape
    if t % period != 0:
        n_pad = period - t % period
        x = jnp.pad(x, ((0, 0), (0, 0), (0, n_pad)), mode="reflect")
        t = t + n_pad
    H, W = t // period, period
    x4 = x.reshape(b, c, H, W)                                   # torch .view
    xi = jnp.transpose(x4, (0, 3, 2, 1)).reshape(b * W, H, c)    # fold W into batch
    xi = xi.astype(jnp.bfloat16)

    fmap = []
    for i in range(5):
        L = prep[f"conv{i}"]
        xi = conv_layer_pallas(xi, L["w"], L["b"], ksize=L["ksize"],
                               stride=L["stride"], pad=L["pad"], lrelu=True)
        fmap.append(_to_nchw(xi, b, W))

    L = prep["conv_post"]
    xi = conv_layer_pallas(xi, L["w"], L["b"], ksize=L["ksize"],
                           stride=L["stride"], pad=L["pad"], lrelu=False)
    xi = xi[:, :, :L["true_cout"]]
    post = _to_nchw(xi, b, W)
    fmap.append(post)
    out = post.reshape(b, -1)                                    # torch.flatten(x, 1, -1)
    return out, fmap


def multi_period_discriminator_forward(y, y_hat, prepared):
    # Conv / leaky-relu are batch-independent, so run y and y_hat through each
    # discriminator as one stacked batch (halves Pallas dispatches), then split.
    b = y.shape[0]
    stacked = jnp.concatenate([y, y_hat], axis=0)
    y_d_rs, y_d_gs, fmap_rs, fmap_gs = [], [], [], []
    for period, prep in prepared:
        out, fmap = discriminator_p_forward(stacked, prep, period)
        y_d_rs.append(out[:b])
        y_d_gs.append(out[b:])
        fmap_rs.append([f[:b] for f in fmap])
        fmap_gs.append([f[b:] for f in fmap])
    return y_d_rs, y_d_gs, fmap_rs, fmap_gs


# ----------------------------------------------------------------------------
# Pure-NumPy f32 reference (no extra XLA compilation) for correctness checking.
# ----------------------------------------------------------------------------
def _np_conv2d_k1(x, w, b, stride, pad):
    """x: (N, Cin, H, W) f32, w: (K, Cin, Cout), b: (Cout,). Conv2d kernel (K,1)."""
    N, Cin, H, W = x.shape
    K = w.shape[0]
    xp = np.pad(x, ((0, 0), (0, 0), (pad, pad), (0, 0)))
    Hp = H + 2 * pad
    Hout = (Hp - K) // stride + 1
    cols = np.stack(
        [xp[:, :, k:k + (Hout - 1) * stride + 1:stride, :] for k in range(K)], axis=2
    )  # (N, Cin, K, Hout, W)
    out = np.einsum("nckhw,kco->nohw", cols, w, optimize=True)
    return out + b[None, :, None, None]


def _reference_discp_np(x, params, period):
    x = np.asarray(x, np.float32)
    b, c, t = x.shape
    if t % period != 0:
        n_pad = period - t % period
        x = np.pad(x, ((0, 0), (0, 0), (0, n_pad)), mode="reflect")
        t = t + n_pad
    xr = x.reshape(b, c, t // period, period)
    fmap = []
    for i in range(5):
        w, bias = params[f"conv{i}"]
        xr = _np_conv2d_k1(xr, np.asarray(w, np.float32), np.asarray(bias, np.float32),
                           _STRIDES[i], get_padding(_KSIZE, 1))
        xr = np.where(xr >= 0, xr, LRELU_SLOPE * xr)
        fmap.append(xr)
    w, bias = params["conv_post"]
    xr = _np_conv2d_k1(xr, np.asarray(w, np.float32), np.asarray(bias, np.float32),
                       1, get_padding(3, 1))
    fmap.append(xr)
    return xr.reshape(b, -1), fmap


def _reference_mpd_np(y, y_hat, raw):
    y_d_rs, y_d_gs, fmap_rs, fmap_gs = [], [], [], []
    for period, params in raw:
        y_d_r, fmap_r = _reference_discp_np(y, params, period)
        y_d_g, fmap_g = _reference_discp_np(y_hat, params, period)
        y_d_rs.append(y_d_r)
        fmap_rs.append(fmap_r)
        y_d_gs.append(y_d_g)
        fmap_gs.append(fmap_g)
    return y_d_rs, y_d_gs, fmap_rs, fmap_gs


if __name__ == "__main__":
    key = jax.random.PRNGKey(0)
    k_y, k_g, k_p = jax.random.split(key, 3)

    b, c, t = 2, 1, 64           # small; t % period != 0 for periods 3/5/7/11
    y = jax.random.normal(k_y, (b, c, t), jnp.float32)
    y_hat = jax.random.normal(k_g, (b, c, t), jnp.float32)

    pkeys = jax.random.split(k_p, len(_PERIODS))
    raw = [(p, init_discp_params(k)) for p, k in zip(_PERIODS, pkeys)]
    prepared = [(p, prepare_discp_params(params)) for p, params in raw]

    outs = multi_period_discriminator_forward(y, y_hat, prepared)
    outs = jax.block_until_ready(outs)
    y_d_rs, y_d_gs, fmap_rs, fmap_gs = outs

    r_y_d_rs, r_y_d_gs, r_fmap_rs, r_fmap_gs = _reference_mpd_np(
        np.asarray(y), np.asarray(y_hat), raw)

    # bf16 matmul inputs with f32 accumulation vs a pure-f32 reference ->
    # mixed-precision tolerances (expected error is well below these bounds).
    RTOL, ATOL = 5e-2, 2e-2
    for i in range(len(_PERIODS)):
        np.testing.assert_allclose(np.asarray(y_d_rs[i]), r_y_d_rs[i],
                                   rtol=RTOL, atol=ATOL)
        np.testing.assert_allclose(np.asarray(y_d_gs[i]), r_y_d_gs[i],
                                   rtol=RTOL, atol=ATOL)
        for a, r in zip(fmap_rs[i], r_fmap_rs[i]):
            assert a.shape == r.shape, (a.shape, r.shape)
            np.testing.assert_allclose(np.asarray(a), r, rtol=RTOL, atol=ATOL)
        for a, r in zip(fmap_gs[i], r_fmap_gs[i]):
            assert a.shape == r.shape, (a.shape, r.shape)
            np.testing.assert_allclose(np.asarray(a), r, rtol=RTOL, atol=ATOL)

    print("KERNEL_OK")
</pallas_src>

<mosaic_0001>
module attributes {stable_mosaic.version = 11 : i64} {
  func.func @_conv_im2col_kernel(%arg0: i32, %arg1: i32, %arg2: memref<8x11x5xbf16, #tpu.memory_space<vmem>>, %arg3: memref<5x32xbf16, #tpu.memory_space<vmem>>, %arg4: memref<1x32xf32, #tpu.memory_space<vmem>>, %arg5: memref<8x11x32xbf16, #tpu.memory_space<vmem>>) attributes {dimension_semantics = [#tpu.dimension_semantics<parallel>, #tpu.dimension_semantics<arbitrary>], iteration_bounds = array<i64: 1, 1>, scalar_prefetch = 0 : i64, scratch_operands = 0 : i64, tpu.core_type = #tpu.core_type<tc>, window_params = [{transform_indices = @transform_0, window_bounds = array<i64: 8, 11, 5>}, {transform_indices = @transform_1, window_bounds = array<i64: 5, 32>}, {transform_indices = @transform_2, window_bounds = array<i64: 1, 32>}, {transform_indices = @transform_3, window_bounds = array<i64: 8, 11, 32>}]} {
    %c0 = arith.constant 0 : index
    %c0_0 = arith.constant 0 : index
    %0 = vector.load %arg3[%c0, %c0_0] : memref<5x32xbf16, #tpu.memory_space<vmem>>, vector<5x32xbf16>
    %c0_1 = arith.constant 0 : index
    %c0_2 = arith.constant 0 : index
    %1 = vector.load %arg4[%c0_1, %c0_2] : memref<1x32xf32, #tpu.memory_space<vmem>>, vector<1x32xf32>
    %c0_3 = arith.constant 0 : index
    %c0_4 = arith.constant 0 : index
    %c0_5 = arith.constant 0 : index
    %2 = vector.load %arg2[%c0_3, %c0_4, %c0_5] : memref<8x11x5xbf16, #tpu.memory_space<vmem>>, vector<1x11x5xbf16>
    %3 = vector.shape_cast %2 : vector<1x11x5xbf16> to vector<11x5xbf16>
    %cst = arith.constant dense<0.000000e+00> : vector<11x32xf32>
    %4 = tpu.matmul %3, %0, %cst {dimension_numbers = #tpu.dot_dimension_numbers<[1], [0], [0], [1], [0, 0, 1, 1], [], []>} : vector<11x5xbf16>, vector<5x32xbf16>, vector<11x32xf32> -> vector<11x32xf32>
    %5 = vector.broadcast %1 : vector<1x32xf32> to vector<11x32xf32>
    %6 = arith.addf %4, %5 : vector<11x32xf32>
    %cst_6 = arith.constant 0.000000e+00 : f32
    %7 = vector.broadcast %cst_6 : f32 to vector<11x32xf32>
    %8 = arith.cmpf oge, %6, %7 : vector<11x32xf32>
    %cst_7 = arith.constant 1.000000e-01 : f32
    %9 = vector.broadcast %cst_7 : f32 to vector<11x32xf32>
    %10 = arith.mulf %9, %6 : vector<11x32xf32>
    %11 = arith.select %8, %6, %10 : vector<11x32xi1>, vector<11x32xf32>
    %12 = arith.truncf %11 : vector<11x32xf32> to vector<11x32xbf16>
    %c0_8 = arith.constant 0 : index
    %c0_9 = arith.constant 0 : index
    %c0_10 = arith.constant 0 : index
    %13 = vector.load %arg5[%c0_8, %c0_9, %c0_10] : memref<8x11x32xbf16, #tpu.memory_space<vmem>>, vector<1x11x32xbf16>
    %14 = vector.shape_cast %13 : vector<1x11x32xbf16> to vector<11x32xbf16>
    %15 = vector.shape_cast %12 : vector<11x32xbf16> to vector<1x11x32xbf16>
    tpu.vector_store %arg5[%c0_8, %c0_9, %c0_10], %15 {strides = array<i32>} : memref<8x11x32xbf16, #tpu.memory_space<vmem>>, vector<1x11x32xbf16>,
    %c1 = arith.constant 1 : index
    %c0_11 = arith.constant 0 : index
    %c0_12 = arith.constant 0 : index
    %16 = vector.load %arg2[%c1, %c0_11, %c0_12] : memref<8x11x5xbf16, #tpu.memory_space<vmem>>, vector<1x11x5xbf16>
    %17 = vector.shape_cast %16 : vector<1x11x5xbf16> to vector<11x5xbf16>
    %cst_13 = arith.constant dense<0.000000e+00> : vector<11x32xf32>
    %18 = tpu.matmul %17, %0, %cst_13 {dimension_numbers = #tpu.dot_dimension_numbers<[1], [0], [0], [1], [0, 0, 1, 1], [], []>} : vector<11x5xbf16>, vector<5x32xbf16>, vector<11x32xf32> -> vector<11x32xf32>
    %19 = vector.broadcast %1 : vector<1x32xf32> to vector<11x32xf32>
    %20 = arith.addf %18, %19 : vector<11x32xf32>
    %cst_14 = arith.constant 0.000000e+00 : f32
    %21 = vector.broadcast %cst_14 : f32 to vector<11x32xf32>
    %22 = arith.cmpf oge, %20, %21 : vector<11x32xf32>
    %cst_15 = arith.constant 1.000000e-01 : f32
    %23 = vector.broadcast %cst_15 : f32 to vector<11x32xf32>
    %24 = arith.mulf %23, %20 : vector<11x32xf32>
    %25 = arith.select %22, %20, %24 : vector<11x32xi1>, vector<11x32xf32>
    %26 = arith.truncf %25 : vector<11x32xf32> to vector<11x32xbf16>
    %c1_16 = arith.constant 1 : index
    %c0_17 = arith.constant 0 : index
    %c0_18 = arith.constant 0 : index
    %27 = vector.load %arg5[%c1_16, %c0_17, %c0_18] : memref<8x11x32xbf16, #tpu.memory_space<vmem>>, vector<1x11x32xbf16>
    %28 = vector.shape_cast %27 : vector<1x11x32xbf16> to vector<11x32xbf16>
    %29 = vector.shape_cast %26 : vector<11x32xbf16> to vector<1x11x32xbf16>
    tpu.vector_store %arg5[%c1_16, %c0_17, %c0_18], %29 {strides = array<i32>} : memref<8x11x32xbf16, #tpu.memory_space<vmem>>, vector<1x11x32xbf16>,
    %c2 = arith.constant 2 : index
    %c0_19 = arith.constant 0 : index
    %c0_20 = arith.constant 0 : index
    %30 = vector.load %arg2[%c2, %c0_19, %c0_20] : memref<8x11x5xbf16, #tpu.memory_space<vmem>>, vector<1x11x5xbf16>
    %31 = vector.shape_cast %30 : vector<1x11x5xbf16> to vector<11x5xbf16>
    %cst_21 = arith.constant dense<0.000000e+00> : vector<11x32xf32>
    %32 = tpu.matmul %31, %0, %cst_21 {dimension_numbers = #tpu.dot_dimension_numbers<[1], [0], [0], [1], [0, 0, 1, 1], [], []>} : vector<11x5xbf16>, vector<5x32xbf16>, vector<11x32xf32> -> vector<11x32xf32>
    %33 = vector.broadcast %1 : vector<1x32xf32> to vector<11x32xf32>
    %34 = arith.addf %32, %33 : vector<11x32xf32>
    %cst_22 = arith.constant 0.000000e+00 : f32
    %35 = vector.broadcast %cst_22 : f32 to vector<11x32xf32>
    %36 = arith.cmpf oge, %34, %35 : vector<11x32xf32>
    %cst_23 = arith.constant 1.000000e-01 : f32
    %37 = vector.broadcast %cst_23 : f32 to vector<11x32xf32>
    %38 = arith.mulf %37, %34 : vector<11x32xf32>
    %39 = arith.select %36, %34, %38 : vector<11x32xi1>, vector<11x32xf32>
    %40 = arith.truncf %39 : vector<11x32xf32> to vector<11x32xbf16>
    %c2_24 = arith.constant 2 : index
    %c0_25 = arith.constant 0 : index
    %c0_26 = arith.constant 0 : index
    %41 = vector.load %arg5[%c2_24, %c0_25, %c0_26] : memref<8x11x32xbf16, #tpu.memory_space<vmem>>, vector<1x11x32xbf16>
    %42 = vector.shape_cast %41 : vector<1x11x32xbf16> to vector<11x32xbf16>
    %43 = vector.shape_cast %40 : vector<11x32xbf16> to vector<1x11x32xbf16>
    tpu.vector_store %arg5[%c2_24, %c0_25, %c0_26], %43 {strides = array<i32>} : memref<8x11x32xbf16, #tpu.memory_space<vmem>>, vector<1x11x32xbf16>,
    %c3 = arith.constant 3 : index
    %c0_27 = arith.constant 0 : index
    %c0_28 = arith.constant 0 : index
    %44 = vector.load %arg2[%c3, %c0_27, %c0_28] : memref<8x11x5xbf16, #tpu.memory_space<vmem>>, vector<1x11x5xbf16>
    %45 = vector.shape_cast %44 : vector<1x11x5xbf16> to vector<11x5xbf16>
    %cst_29 = arith.constant dense<0.000000e+00> : vector<11x32xf32>
    %46 = tpu.matmul %45, %0, %cst_29 {dimension_numbers = #tpu.dot_dimension_numbers<[1], [0], [0], [1], [0, 0, 1, 1], [], []>} : vector<11x5xbf16>, vector<5x32xbf16>, vector<11x32xf32> -> vector<11x32xf32>
    %47 = vector.broadcast %1 : vector<1x32xf32> to vector<11x32xf32>
    %48 = arith.addf %46, %47 : vector<11x32xf32>
    %cst_30 = arith.constant 0.000000e+00 : f32
    %49 = vector.broadcast %cst_30 : f32 to vector<11x32xf32>
    %50 = arith.cmpf oge, %48, %49 : vector<11x32xf32>
    %cst_31 = arith.constant 1.000000e-01 : f32
    %51 = vector.broadcast %cst_31 : f32 to vector<11x32xf32>
    %52 = arith.mulf %51, %48 : vector<11x32xf32>
    %53 = arith.select %50, %48, %52 : vector<11x32xi1>, vector<11x32xf32>
    %54 = arith.truncf %53 : vector<11x32xf32> to vector<11x32xbf16>
    %c3_32 = arith.constant 3 : index
    %c0_33 = arith.constant 0 : index
    %c0_34 = arith.constant 0 : index
    %55 = vector.load %arg5[%c3_32, %c0_33, %c0_34] : memref<8x11x32xbf16, #tpu.memory_space<vmem>>, vector<1x11x32xbf16>
    %56 = vector.shape_cast %55 : vector<1x11x32xbf16> to vector<11x32xbf16>
    %57 = vector.shape_cast %54 : vector<11x32xbf16> to vector<1x11x32xbf16>
    tpu.vector_store %arg5[%c3_32, %c0_33, %c0_34], %57 {strides = array<i32>} : memref<8x11x32xbf16, #tpu.memory_space<vmem>>, vector<1x11x32xbf16>,
    %c4 = arith.constant 4 : index
    %c0_35 = arith.constant 0 : index
    %c0_36 = arith.constant 0 : index
    %58 = vector.load %arg2[%c4, %c0_35, %c0_36] : memref<8x11x5xbf16, #tpu.memory_space<vmem>>, vector<1x11x5xbf16>
    %59 = vector.shape_cast %58 : vector<1x11x5xbf16> to vector<11x5xbf16>
    %cst_37 = arith.constant dense<0.000000e+00> : vector<11x32xf32>
    %60 = tpu.matmul %59, %0, %cst_37 {dimension_numbers = #tpu.dot_dimension_numbers<[1], [0], [0], [1], [0, 0, 1, 1], [], []>} : vector<11x5xbf16>, vector<5x32xbf16>, vector<11x32xf32> -> vector<11x32xf32>
    %61 = vector.broadcast %1 : vector<1x32xf32> to vector<11x32xf32>
    %62 = arith.addf %60, %61 : vector<11x32xf32>
    %cst_38 = arith.constant 0.000000e+00 : f32
    %63 = vector.broadcast %cst_38 : f32 to vector<11x32xf32>
    %64 = arith.cmpf oge, %62, %63 : vector<11x32xf32>
    %cst_39 = arith.constant 1.000000e-01 : f32
    %65 = vector.broadcast %cst_39 : f32 to vector<11x32xf32>
    %66 = arith.mulf %65, %62 : vector<11x32xf32>
    %67 = arith.select %64, %62, %66 : vector<11x32xi1>, vector<11x32xf32>
    %68 = arith.truncf %67 : vector<11x32xf32> to vector<11x32xbf16>
    %c4_40 = arith.constant 4 : index
    %c0_41 = arith.constant 0 : index
    %c0_42 = arith.constant 0 : index
    %69 = vector.load %arg5[%c4_40, %c0_41, %c0_42] : memref<8x11x32xbf16, #tpu.memory_space<vmem>>, vector<1x11x32xbf16>
    %70 = vector.shape_cast %69 : vector<1x11x32xbf16> to vector<11x32xbf16>
    %71 = vector.shape_cast %68 : vector<11x32xbf16> to vector<1x11x32xbf16>
    tpu.vector_store %arg5[%c4_40, %c0_41, %c0_42], %71 {strides = array<i32>} : memref<8x11x32xbf16, #tpu.memory_space<vmem>>, vector<1x11x32xbf16>,
    %c5 = arith.constant 5 : index
    %c0_43 = arith.constant 0 : index
    %c0_44 = arith.constant 0 : index
    %72 = vector.load %arg2[%c5, %c0_43, %c0_44] : memref<8x11x5xbf16, #tpu.memory_space<vmem>>, vector<1x11x5xbf16>
    %73 = vector.shape_cast %72 : vector<1x11x5xbf16> to vector<11x5xbf16>
    %cst_45 = arith.constant dense<0.000000e+00> : vector<11x32xf32>
    %74 = tpu.matmul %73, %0, %cst_45 {dimension_numbers = #tpu.dot_dimension_numbers<[1], [0], [0], [1], [0, 0, 1, 1], [], []>} : vector<11x5xbf16>, vector<5x32xbf16>, vector<11x32xf32> -> vector<11x32xf32>
    %75 = vector.broadcast %1 : vector<1x32xf32> to vector<11x32xf32>
    %76 = arith.addf %74, %75 : vector<11x32xf32>
    %cst_46 = arith.constant 0.000000e+00 : f32
    %77 = vector.broadcast %cst_46 : f32 to vector<11x32xf32>
    %78 = arith.cmpf oge, %76, %77 : vector<11x32xf32>
    %cst_47 = arith.constant 1.000000e-01 : f32
    %79 = vector.broadcast %cst_47 : f32 to vector<11x32xf32>
    %80 = arith.mulf %79, %76 : vector<11x32xf32>
    %81 = arith.select %78, %76, %80 : vector<11x32xi1>, vector<11x32xf32>
    %82 = arith.truncf %81 : vector<11x32xf32> to vector<11x32xbf16>
    %c5_48 = arith.constant 5 : index
    %c0_49 = arith.constant 0 : index
    %c0_50 = arith.constant 0 : index
    %83 = vector.load %arg5[%c5_48, %c0_49, %c0_50] : memref<8x11x32xbf16, #tpu.memory_space<vmem>>, vector<1x11x32xbf16>
    %84 = vector.shape_cast %83 : vector<1x11x32xbf16> to vector<11x32xbf16>
    %85 = vector.shape_cast %82 : vector<11x32xbf16> to vector<1x11x32xbf16>
    tpu.vector_store %arg5[%c5_48, %c0_49, %c0_50], %85 {strides = array<i32>} : memref<8x11x32xbf16, #tpu.memory_space<vmem>>, vector<1x11x32xbf16>,
    %c6 = arith.constant 6 : index
    %c0_51 = arith.constant 0 : index
    %c0_52 = arith.constant 0 : index
    %86 = vector.load %arg2[%c6, %c0_51, %c0_52] : memref<8x11x5xbf16, #tpu.memory_space<vmem>>, vector<1x11x5xbf16>
    %87 = vector.shape_cast %86 : vector<1x11x5xbf16> to vector<11x5xbf16>
    %cst_53 = arith.constant dense<0.000000e+00> : vector<11x32xf32>
    %88 = tpu.matmul %87, %0, %cst_53 {dimension_numbers = #tpu.dot_dimension_numbers<[1], [0], [0], [1], [0, 0, 1, 1], [], []>} : vector<11x5xbf16>, vector<5x32xbf16>, vector<11x32xf32> -> vector<11x32xf32>
    %89 = vector.broadcast %1 : vector<1x32xf32> to vector<11x32xf32>
    %90 = arith.addf %88, %89 : vector<11x32xf32>
    %cst_54 = arith.constant 0.000000e+00 : f32
    %91 = vector.broadcast %cst_54 : f32 to vector<11x32xf32>
    %92 = arith.cmpf oge, %90, %91 : vector<11x32xf32>
    %cst_55 = arith.constant 1.000000e-01 : f32
    %93 = vector.broadcast %cst_55 : f32 to vector<11x32xf32>
    %94 = arith.mulf %93, %90 : vector<11x32xf32>
    %95 = arith.select %92, %90, %94 : vector<11x32xi1>, vector<11x32xf32>
    %96 = arith.truncf %95 : vector<11x32xf32> to vector<11x32xbf16>
    %c6_56 = arith.constant 6 : index
    %c0_57 = arith.constant 0 : index
    %c0_58 = arith.constant 0 : index
    %97 = vector.load %arg5[%c6_56, %c0_57, %c0_58] : memref<8x11x32xbf16, #tpu.memory_space<vmem>>, vector<1x11x32xbf16>
    %98 = vector.shape_cast %97 : vector<1x11x32xbf16> to vector<11x32xbf16>
    %99 = vector.shape_cast %96 : vector<11x32xbf16> to vector<1x11x32xbf16>
    tpu.vector_store %arg5[%c6_56, %c0_57, %c0_58], %99 {strides = array<i32>} : memref<8x11x32xbf16, #tpu.memory_space<vmem>>, vector<1x11x32xbf16>,
    %c7 = arith.constant 7 : index
    %c0_59 = arith.constant 0 : index
    %c0_60 = arith.constant 0 : index
    %100 = vector.load %arg2[%c7, %c0_59, %c0_60] : memref<8x11x5xbf16, #tpu.memory_space<vmem>>, vector<1x11x5xbf16>
    %101 = vector.shape_cast %100 : vector<1x11x5xbf16> to vector<11x5xbf16>
    %cst_61 = arith.constant dense<0.000000e+00> : vector<11x32xf32>
    %102 = tpu.matmul %101, %0, %cst_61 {dimension_numbers = #tpu.dot_dimension_numbers<[1], [0], [0], [1], [0, 0, 1, 1], [], []>} : vector<11x5xbf16>, vector<5x32xbf16>, vector<11x32xf32> -> vector<11x32xf32>
    %103 = vector.broadcast %1 : vector<1x32xf32> to vector<11x32xf32>
    %104 = arith.addf %102, %103 : vector<11x32xf32>
    %cst_62 = arith.constant 0.000000e+00 : f32
    %105 = vector.broadcast %cst_62 : f32 to vector<11x32xf32>
    %106 = arith.cmpf oge, %104, %105 : vector<11x32xf32>
    %cst_63 = arith.constant 1.000000e-01 : f32
    %107 = vector.broadcast %cst_63 : f32 to vector<11x32xf32>
    %108 = arith.mulf %107, %104 : vector<11x32xf32>
    %109 = arith.select %106, %104, %108 : vector<11x32xi1>, vector<11x32xf32>
    %110 = arith.truncf %109 : vector<11x32xf32> to vector<11x32xbf16>
    %c7_64 = arith.constant 7 : index
    %c0_65 = arith.constant 0 : index
    %c0_66 = arith.constant 0 : index
    %111 = vector.load %arg5[%c7_64, %c0_65, %c0_66] : memref<8x11x32xbf16, #tpu.memory_space<vmem>>, vector<1x11x32xbf16>
    %112 = vector.shape_cast %111 : vector<1x11x32xbf16> to vector<11x32xbf16>
    %113 = vector.shape_cast %110 : vector<11x32xbf16> to vector<1x11x32xbf16>
    tpu.vector_store %arg5[%c7_64, %c0_65, %c0_66], %113 {strides = array<i32>} : memref<8x11x32xbf16, #tpu.memory_space<vmem>>, vector<1x11x32xbf16>,
    return
  }
  func.func @transform_0(%arg0: i32, %arg1: i32) -> (i32, i32, i32) {
    %c0_i32 = arith.constant 0 : i32
    %c0_i32_0 = arith.constant 0 : i32
    %c0_i32_1 = arith.constant 0 : i32
    return %arg1, %c0_i32, %c0_i32_0 : i32, i32, i32
  }
  func.func @transform_1(%arg0: i32, %arg1: i32) -> (i32, i32) {
    %c0_i32 = arith.constant 0 : i32
    %c0_i32_0 = arith.constant 0 : i32
    return %c0_i32, %arg0 : i32, i32
  }
  func.func @transform_2(%arg0: i32, %arg1: i32) -> (i32, i32) {
    %c0_i32 = arith.constant 0 : i32
    %c0_i32_0 = arith.constant 0 : i32
    return %c0_i32, %arg0 : i32, i32
  }
  func.func @transform_3(%arg0: i32, %arg1: i32) -> (i32, i32, i32) {
    %c0_i32 = arith.constant 0 : i32
    %c0_i32_0 = arith.constant 0 : i32
    return %arg1, %c0_i32, %arg0 : i32, i32, i32
  }
}

</mosaic_0001>

<bundles_post_ra>
// kernel: tpu_custom_call.1
= control target key start
LH: loop header
LB: loop body
LE: loop exit
PB: predicated region body
PF: predicated region fallthrough
CT: control target
= control target key end

     0   :  { %vm31_vm0 = vcmask 1041408   ;;  %vm32_vm1 = vcmask 1042432   ;;  %v423_v1 = vmov 65535   ;;  %vm27_vm2 = vcmask 39936   ;;  %s626_s1 = inlined_call_operand.vmem [shape: bf16[5,32], index: 1, kind: input, shape index: {}]   ;;  %s627_s0 = inlined_call_operand.vmem [shape: bf16[8,11,5], index: 0, kind: input, shape index: {}]   ;;  %s628_s2 = inlined_call_operand.vmem [shape: f32[1,32], index: 2, kind: input, shape index: {}]   ;;  %s629_s3 = inlined_call_operand.vmem [shape: bf16[8,11,32], index: 3, kind: output, shape index: {}]  }
   0x1   :  { %v15_v0 = vld [vmem:[%s626_s1] sm:$0x7]  ;;  %v33_v2 = vsel %vm31_vm0, 4294967295, %v423_v1  ;;  %v413_v5 = vld [vmem:[%s627_s0] sm:$0x30]  ;;  %vm60_vm5 = vcmask 257024  }
   0x2   :  { %v340_v3 = vld [vmem:[%s627_s0] sm:$0xf]  ;;  %v34_v4 = vsel %vm32_vm1, %v33_v2, 0  ;;  %v347_v6 = vld [vmem:[%s627_s0 + $0x8] sm:$0xf]  ;;  %vm62_vm6 = vcmask 254976  }
   0x3   :  { %v36_v7 = vand.u32 %v34_v4, %v15_v0  ;;  %v414_v8 = vld [vmem:[%s627_s0 + $0x8] sm:$0x30]  ;;  %v357_v9 = vld [vmem:[%s627_s0 + $0x10] sm:$0xf]  ;;  %v415_v10 = vld [vmem:[%s627_s0 + $0x10] sm:$0x30]  ;;  %v341_v11 = vor.u32 %v413_v5, %v340_v3 }
   0x4   :  { %v348_v12 = vor.u32 %v414_v8, %v347_v6  ;;  %v367_v13 = vld [vmem:[%s627_s0 + $0x18] sm:$0xf]  ;;  %v416_v14 = vld [vmem:[%s627_s0 + $0x18] sm:$0x30]  ;;  %v358_v15 = vor.u32 %v415_v10, %v357_v9  ;;  %v377_v17 = vld [vmem:[%s627_s0 + $0x20] sm:$0xf] }
   0x5   :  { %45 = vmatpush.bf16.msra.mxu0 %v36_v7  ;;  %86 = vmatpush.bf16.msra.mxu1 %v36_v7  ;;  %v368_v16 = vor.u32 %v416_v14, %v367_v13  ;;  %v417_v18 = vld [vmem:[%s627_s0 + $0x20] sm:$0x30]  ;;  %v387_v19 = vld [vmem:[%s627_s0 + $0x28] sm:$0xf]  ;;  %v418_v20 = vld [vmem:[%s627_s0 + $0x28] sm:$0x30] }
   0x6   :  { %124 = vmatpush.bf16.msra.mxu2 %v36_v7  ;;  %162 = vmatpush.bf16.msra.mxu3 %v36_v7  ;;  %v397_v21 = vld [vmem:[%s627_s0 + $0x30] sm:$0xf]  ;;  %v419_v22 = vld [vmem:[%s627_s0 + $0x30] sm:$0x30]  ;;  %v407_v23 = vld [vmem:[%s627_s0 + $0x38] sm:$0xf]  ;;  %v378_v25 = vor.u32 %v417_v18, %v377_v17  ;;  %v388_v26 = vor.u32 %v418_v20, %v387_v19 }
   0x7   :  { %v420_v24 = vld [vmem:[%s627_s0 + $0x38] sm:$0x30]  ;;  %v398_v27 = vor.u32 %v419_v22, %v397_v21  ;;  %v506_v29 = vld [vmem:[%s628_s2] ss:$0 sm:$0xff]  ;;  %vm63_vm7 = vsmask.f32 1280 }
   0x8   :  { %342 = vmatmul.msk.bf16.vlgmr.msra.gmra.mxu0 %vm27_vm2, %v341_v11  ;;  %349 = vmatmul.msk.bf16.vlgmr.msra.gmra.mxu1 %vm27_vm2, %v348_v12  ;;  %v408_v28 = vor.u32 %v420_v24, %v407_v23  ;;  %vm524_vm12 = vmand %vm62_vm6, %vm63_vm7  ;;  %v65_v58 = vld [vmem:[%s629_s3 + $0x4] sm:$0x3]  ;;  %v351_v60 = vld [vmem:[%s629_s3 + $0xc] sm:$0x3] }
   0x9   :  { %359 = vmatmul.msk.bf16.vlgmr.msra.gmra.mxu2 %vm27_vm2, %v358_v15  ;;  %369 = vmatmul.msk.bf16.vlgmr.msra.gmra.mxu3 %vm27_vm2, %v368_v16  ;;  %v361_v13 = vld [vmem:[%s629_s3 + $0x14] sm:$0x3]  ;;  %v371_v17 = vld [vmem:[%s629_s3 + $0x1c] sm:$0x3] }
   0xa   :  { %276 = vmatpush.bf16.msrb.mxu2 %v36_v7  ;;  %314 = vmatpush.bf16.msrb.mxu3 %v36_v7 }
   0xb   :  { %200 = vmatpush.bf16.msrb.mxu0 %v36_v7  ;;  %238 = vmatpush.bf16.msrb.mxu1 %v36_v7 }
  0x18   :  { %379 = vmatmul.msk.bf16.vlgmr.msrb.gmra.mxu0 %vm27_vm2, %v378_v25  ;;  %389 = vmatmul.msk.bf16.vlgmr.msrb.gmra.mxu1 %vm27_vm2, %v388_v26 }
  0x19   :  { %399 = vmatmul.msk.bf16.vlgmr.msrb.gmra.mxu2 %vm27_vm2, %v398_v27  ;;  %409 = vmatmul.msk.bf16.vlgmr.msrb.gmra.mxu3 %vm27_vm2, %v408_v28 }
  0x85   :  { %v47_v30 = vpop.f32.mrf.mxu0  ;;  %v88_v31 = vpop.f32.mrf.mxu1 }
  0x86   :  { %v48_v32 = vadd.f32 %v506_v29, %v47_v30  ;;  %v89_v33 = vadd.f32 %v506_v29, %v88_v31 }
  0x88   :  { %vm52_vm3 = vcmp.ge.f32.partialorder %v48_v32, 0.0  ;;  %v54_v34 = vmul.f32 0.1, %v48_v32  ;;  %vm93_vm4 = vcmp.ge.f32.partialorder %v89_v33, 0.0  ;;  %v95_v35 = vmul.f32 0.1, %v89_v33 }
  0x8a   :  { %v56_v36 = vsel %vm52_vm3, %v48_v32, %v54_v34  ;;  %v97_v37 = vsel %vm93_vm4, %v89_v33, %v95_v35 }
  0x8b   :  { %v58_v38 = vpack.c.bf16 %v56_v36, %v56_v36  ;;  %v99_v39 = vpack.c.bf16 %v97_v37, %v97_v37 }
  0x8c   :  { %v126_v40 = vpop.f32.mrf.mxu2  ;;  %v164_v41 = vpop.f32.mrf.mxu3 }
  0x8d   :  { %61 = vst.msk [vmem:[%s629_s3] sm:$0xf] %vm60_vm5, %v58_v38  ;;  %v127_v42 = vadd.f32 %v506_v29, %v126_v40  ;;  %v165_v43 = vadd.f32 %v506_v29, %v164_v41  ;;  %v49_v44 = vpop.f32.mrf.mxu0  ;;  %v90_v45 = vpop.f32.mrf.mxu1 }
  0x8e   :  { %350 = vst.msk [vmem:[%s629_s3 + $0x8] sm:$0xf] %vm60_vm5, %v99_v39  ;;  %v50_v46 = vadd.f32 %v506_v29, %v49_v44  ;;  %v91_v47 = vadd.f32 %v506_v29, %v90_v45  ;;  %v391_v45 = vld [vmem:[%s629_s3 + $0x2c] sm:$0x3] }
  0x8f   :  { %vm131_vm8 = vcmp.ge.f32.partialorder %v127_v42, 0.0  ;;  %v133_v48 = vmul.f32 0.1, %v127_v42  ;;  %vm169_vm9 = vcmp.ge.f32.partialorder %v165_v43, 0.0  ;;  %v171_v49 = vmul.f32 0.1, %v165_v43 }
  0x90   :  { %vm53_vm10 = vcmp.ge.f32.partialorder %v50_v46, 0.0  ;;  %v55_v50 = vmul.f32 0.1, %v50_v46  ;;  %vm94_vm11 = vcmp.ge.f32.partialorder %v91_v47, 0.0  ;;  %v96_v51 = vmul.f32 0.1, %v91_v47 }
  0x91   :  { %v135_v52 = vsel %vm131_vm8, %v127_v42, %v133_v48  ;;  %v173_v53 = vsel %vm169_vm9, %v165_v43, %v171_v49  ;;  %v381_v43 = vld [vmem:[%s629_s3 + $0x24] sm:$0x3] }
  0x92   :  { %v137_v54 = vpack.c.bf16 %v135_v52, %v135_v52  ;;  %v175_v55 = vpack.c.bf16 %v173_v53, %v173_v53  ;;  %v57_v56 = vsel %vm53_vm10, %v50_v46, %v55_v50  ;;  %v98_v59 = vsel %vm94_vm11, %v91_v47, %v96_v51 }
  0x93   :  { %v59_v61 = vpack.c.bf16 %v57_v56, %v57_v56  ;;  %v100_v62 = vpack.c.bf16 %v98_v59, %v98_v59 }
  0x94   :  { %360 = vst.msk [vmem:[%s629_s3 + $0x10] sm:$0xf] %vm60_vm5, %v137_v54  ;;  %v128_v63 = vpop.f32.mrf.mxu2  ;;  %v166_v0 = vpop.f32.mrf.mxu3 }
  0x95   :  { %370 = vst.msk [vmem:[%s629_s3 + $0x18] sm:$0xf] %vm60_vm5, %v175_v55  ;;  %v66_v1 = vsel %vm524_vm12, %v59_v61, %v65_v58  ;;  %v104_v2 = vsel %vm524_vm12, %v100_v62, %v351_v60  ;;  %v129_v3 = vadd.f32 %v506_v29, %v128_v63  ;;  %v167_v4 = vadd.f32 %v506_v29, %v166_v0  ;;  %v202_v5 = vpop.f32.mrf.mxu0  ;;  %v240_v6 = vpop.f32.mrf.mxu1  ;;  %v411_v60 = vld [vmem:[%s629_s3 + $0x3c] sm:$0x3] }
  0x96   :  { %67 = vst [vmem:[%s629_s3 + $0x4] sm:$0x3] %v66_v1  ;;  %v203_v7 = vadd.f32 %v506_v29, %v202_v5  ;;  %v241_v8 = vadd.f32 %v506_v29, %v240_v6 }
  0x97   :  { %352 = vst [vmem:[%s629_s3 + $0xc] sm:$0x3] %v104_v2  ;;  %vm132_vm13 = vcmp.ge.f32.partialorder %v129_v3, 0.0  ;;  %v134_v9 = vmul.f32 0.1, %v129_v3  ;;  %vm170_vm14 = vcmp.ge.f32.partialorder %v167_v4, 0.0 }
  0x98   :  { %v172_v10 = vmul.f32 0.1, %v167_v4  ;;  %vm207_vm15 = vcmp.ge.f32.partialorder %v203_v7, 0.0  ;;  %v209_v11 = vmul.f32 0.1, %v203_v7  ;;  %vm245_vm0 = vcmp.ge.f32.partialorder %v241_v8, 0.0 }
  0x99   :  { %v136_v12 = vsel %vm132_vm13, %v129_v3, %v134_v9  ;;  %v247_v14 = vmul.f32 0.1, %v241_v8 }
  0x9a   :  { %v138_v15 = vpack.c.bf16 %v136_v12, %v136_v12  ;;  %v174_v16 = vsel %vm170_vm14, %v167_v4, %v172_v10  ;;  %v211_v18 = vsel %vm207_vm15, %v203_v7, %v209_v11 }
  0x9b   :  { %v176_v19 = vpack.c.bf16 %v174_v16, %v174_v16  ;;  %v213_v20 = vpack.c.bf16 %v211_v18, %v211_v18  ;;  %v249_v21 = vsel %vm245_vm0, %v241_v8, %v247_v14 }
  0x9c   :  { %v142_v22 = vsel %vm524_vm12, %v138_v15, %v361_v13  ;;  %v251_v23 = vpack.c.bf16 %v249_v21, %v249_v21  ;;  %v278_v24 = vpop.f32.mrf.mxu2  ;;  %v316_v25 = vpop.f32.mrf.mxu3 }
  0x9d   :  { %362 = vst [vmem:[%s629_s3 + $0x14] sm:$0x3] %v142_v22  ;;  %v180_v26 = vsel %vm524_vm12, %v176_v19, %v371_v17  ;;  %v279_v27 = vadd.f32 %v506_v29, %v278_v24  ;;  %v317_v28 = vadd.f32 %v506_v29, %v316_v25  ;;  %v204_v30 = vpop.f32.mrf.mxu0  ;;  %v242_v31 = vpop.f32.mrf.mxu1 }
  0x9e   :  { %372 = vst [vmem:[%s629_s3 + $0x1c] sm:$0x3] %v180_v26  ;;  %v205_v32 = vadd.f32 %v506_v29, %v204_v30  ;;  %v243_v33 = vadd.f32 %v506_v29, %v242_v31 }
  0x9f   :  { %380 = vst.msk [vmem:[%s629_s3 + $0x20] sm:$0xf] %vm60_vm5, %v213_v20  ;;  %vm283_vm1 = vcmp.ge.f32.partialorder %v279_v27, 0.0  ;;  %v285_v34 = vmul.f32 0.1, %v279_v27  ;;  %vm321_vm2 = vcmp.ge.f32.partialorder %v317_v28, 0.0 }
  0xa0   :  { %390 = vst.msk [vmem:[%s629_s3 + $0x28] sm:$0xf] %vm60_vm5, %v251_v23  ;;  %v323_v35 = vmul.f32 0.1, %v317_v28  ;;  %vm208_vm3 = vcmp.ge.f32.partialorder %v205_v32, 0.0  ;;  %vm246_vm4 = vcmp.ge.f32.partialorder %v243_v33, 0.0 }
  0xa1   :  { %v287_v36 = vsel %vm283_vm1, %v279_v27, %v285_v34  ;;  %v210_v37 = vmul.f32 0.1, %v205_v32  ;;  %v248_v38 = vmul.f32 0.1, %v243_v33 }
  0xa2   :  { %v289_v39 = vpack.c.bf16 %v287_v36, %v287_v36  ;;  %v325_v40 = vsel %vm321_vm2, %v317_v28, %v323_v35 }
  0xa3   :  { %v327_v41 = vpack.c.bf16 %v325_v40, %v325_v40  ;;  %v212_v42 = vsel %vm208_vm3, %v205_v32, %v210_v37  ;;  %v250_v44 = vsel %vm246_vm4, %v243_v33, %v248_v38 }
  0xa4   :  { %400 = vst.msk [vmem:[%s629_s3 + $0x30] sm:$0xf] %vm60_vm5, %v289_v39  ;;  %v214_v46 = vpack.c.bf16 %v212_v42, %v212_v42  ;;  %v252_v47 = vpack.c.bf16 %v250_v44, %v250_v44  ;;  %v280_v48 = vpop.f32.mrf.mxu2  ;;  %v318_v49 = vpop.f32.mrf.mxu3 }
  0xa5   :  { %410 = vst.msk [vmem:[%s629_s3 + $0x38] sm:$0xf] %vm60_vm5, %v327_v41  ;;  %v281_v50 = vadd.f32 %v506_v29, %v280_v48  ;;  %v319_v51 = vadd.f32 %v506_v29, %v318_v49  ;;  %v401_v29 = vld [vmem:[%s629_s3 + $0x34] sm:$0x3] }
  0xa6   :  { %v218_v52 = vsel %vm524_vm12, %v214_v46, %v381_v43  ;;  %v256_v53 = vsel %vm524_vm12, %v252_v47, %v391_v45 }
  0xa7   :  { %382 = vst [vmem:[%s629_s3 + $0x24] sm:$0x3] %v218_v52  ;;  %vm284_vm6 = vcmp.ge.f32.partialorder %v281_v50, 0.0  ;;  %v286_v54 = vmul.f32 0.1, %v281_v50  ;;  %vm322_vm7 = vcmp.ge.f32.partialorder %v319_v51, 0.0 }
  0xa8   :  { %392 = vst [vmem:[%s629_s3 + $0x2c] sm:$0x3] %v256_v53  ;;  %v324_v55 = vmul.f32 0.1, %v319_v51 }
  0xa9   :  { %v288_v56 = vsel %vm284_vm6, %v281_v50, %v286_v54 }
  0xaa   :  { %v290_v58 = vpack.c.bf16 %v288_v56, %v288_v56  ;;  %v326_v59 = vsel %vm322_vm7, %v319_v51, %v324_v55 }
  0xab   :  { %v328_v61 = vpack.c.bf16 %v326_v59, %v326_v59 }
  0xac   :  { %v294_v62 = vsel %vm524_vm12, %v290_v58, %v401_v29 }
  0xad   :  { %402 = vst [vmem:[%s629_s3 + $0x34] sm:$0x3] %v294_v62  ;;  %v332_v63 = vsel %vm524_vm12, %v328_v61, %v411_v60 }
  0xae   :  { %412 = vst [vmem:[%s629_s3 + $0x3c] sm:$0x3] %v332_v63 }

</bundles_post_ra>
